<compile_context>
chip_gen: v7x
topology: tpu7x:2x2x1
jax: 0.10.0
libtpu: 0.0.40
codegen_flags: <defaults>
</compile_context>

<pallas_src>
import jax
import jax.numpy as jnp
from jax.experimental import pallas as pl
from jax.experimental.pallas import tpu as pltpu

# Global mirroring the PyTorch module's `latent_space` global.
latent_space = None


def _alias_identity_kernel(x_hbm, o_hbm, flag_smem):
    # Output buffer aliases the input buffer (input_output_aliases={0: 0}),
    # so no bytes move and nothing needs to be computed.  The single SMEM
    # scalar store keeps the traced body non-empty for Mosaic lowering; it
    # costs one scalar store and nothing else.
    del x_hbm, o_hbm
    flag_smem[0] = jnp.int32(0)


def _pallas_identity_impl(x):
    """Identity through a zero-byte (aliased) pallas_call."""
    if x.size == 0:
        # Zero-element edge case: nothing to alias/copy; skip the kernel.
        return x
    return pl.pallas_call(
        _alias_identity_kernel,
        out_shape=jax.ShapeDtypeStruct(x.shape, x.dtype),
        in_specs=[pl.BlockSpec(memory_space=pl.ANY)],
        out_specs=pl.BlockSpec(memory_space=pl.ANY),
        scratch_shapes=[pltpu.SMEM((1,), jnp.int32)],
        input_output_aliases={0: 0},   # P8: output IS the input buffer
    )(x)


# pallas_call has no automatic VJP; the PyTorch layer is gradient-transparent,
# so give the wrapper an explicit identity backward.
@jax.custom_vjp
def _pallas_identity(x):
    return _pallas_identity_impl(x)


def _pallas_identity_fwd(x):
    return _pallas_identity_impl(x), None


def _pallas_identity_bwd(_, g):
    return (g,)


_pallas_identity.defvjp(_pallas_identity_fwd, _pallas_identity_bwd)


def analysis_layer(x):
    """JAX/Pallas equivalent of AnalysisLayer.forward (eager use).

    Side effect: sets the module-level global `latent_space` to a detached
    (stop-gradient) view of x.  Returns x's values unchanged (identity).

    NOTE: like the PyTorch global, the side effect is only meaningful when
    called eagerly; under jax.jit the global captures a tracer.  Use
    `analysis_layer_with_latent` when jitting.
    """
    global latent_space
    y = _pallas_identity(x)
    latent_space = jax.lax.stop_gradient(y)   # mirrors x.detach()
    return y


def analysis_layer_with_latent(x):
    """jit-friendly variant: returns (output, detached latent) explicitly."""
    y = _pallas_identity(x)
    return y, jax.lax.stop_gradient(y)


if __name__ == "__main__":
    key = jax.random.PRNGKey(0)
    # NCHW input, consistent with a conv-style analysis layer.
    x = jax.random.normal(key, (2, 4, 16, 16), dtype=jnp.float32)

    out = jax.block_until_ready(analysis_layer(x))
    latent = jax.block_until_ready(latent_space)

    # Identity semantics + latent_space capture must hold exactly.
    assert out.shape == x.shape and out.dtype == x.dtype
    assert bool(jnp.all(out == x))
    assert bool(jnp.all(latent == x))

    # jit-friendly path; arbitrary (non-128-multiple) shape is fine because
    # nothing is ever staged through VMEM.
    x2 = jax.random.normal(jax.random.PRNGKey(0), (3, 5, 7), dtype=jnp.float32)
    y2, lat2 = jax.block_until_ready(jax.jit(analysis_layer_with_latent)(x2))
    assert bool(jnp.all(y2 == x2)) and bool(jnp.all(lat2 == x2))

    # Gradient transparency (the PyTorch layer is an identity for autograd).
    g = jax.grad(lambda t: jnp.sum(analysis_layer_with_latent(t)[0] * 2.0))(x2)
    assert bool(jnp.all(g == 2.0))

    # Zero-element edge case skips the kernel entirely.
    x0 = jnp.zeros((0, 4), dtype=jnp.float32)
    y0, _ = analysis_layer_with_latent(x0)
    assert y0.shape == x0.shape

    print("KERNEL_OK")
</pallas_src>

<mosaic_0001>
module attributes {stable_mosaic.version = 11 : i64} {
  func.func @_alias_identity_kernel(%arg0: memref<2x4x16x16xf32, #tpu.memory_space<any>>, %arg1: memref<2x4x16x16xf32, #tpu.memory_space<any>>, %arg2: memref<1xi32, #tpu.memory_space<smem>>) attributes {dimension_semantics = [], scalar_prefetch = 0 : i64, scratch_operands = 1 : i64, tpu.core_type = #tpu.core_type<tc>} {
    %c0_i32 = arith.constant 0 : i32
    %c0 = arith.constant 0 : index
    %0 = memref.load %arg2[%c0] : memref<1xi32, #tpu.memory_space<smem>>
    memref.store %c0_i32, %arg2[%c0] : memref<1xi32, #tpu.memory_space<smem>>
    return
  }
}

</mosaic_0001>

<bundles_post_ra>
// kernel: tpu_custom_call.1
= control target key start
LH: loop header
LB: loop body
LE: loop exit
PB: predicated region body
PF: predicated region fallthrough
CT: control target
= control target key end

     0   :  { %s18_s0 = inlined_call_operand.hbm [shape: f32[2,4,16,16], index: 0, kind: input, shape index: {}, may-alias: {0,1}]   ;;  %s19_s1 = inlined_call_operand.hbm [shape: f32[2,4,16,16], index: 1, kind: output, shape index: {}, may-alias: {0,1}]  }

</bundles_post_ra>
